<compile_context>
chip_gen: v7x
topology: tpu7x:2x2x1
jax: 0.10.0
libtpu: 0.0.40
codegen_flags: <defaults>
</compile_context>

<pallas_src>
import functools

import jax
import jax.numpy as jnp
import numpy as np
from jax.experimental import pallas as pl
from jax.experimental.pallas import tpu as pltpu


def _round_up(x, m):
    return (x + m - 1) // m * m


def _pick_tile_mid(m_total, max_mid):
    """Largest divisor of m_total that is a multiple of 8 (or m_total itself)
    and <= max_mid; falls back to the smallest legal candidate."""
    cands = [d for d in range(8, m_total + 1, 8) if m_total % d == 0]
    if m_total not in cands:
        cands.append(m_total)
    cands.sort()
    fitting = [d for d in cands if d <= max_mid]
    return fitting[-1] if fitting else cands[0]


# ------------------------------ fused kernel ------------------------------- #

def _fused_loss_kernel(seg_logit_ref, seg_tgt_ref, cls_logit_ref, cls_label_ref,
                       cls_w_ref, dice_out_ref, ce_out_ref, acc_ref,
                       *, num_rows, num_cls, compute_dtype):
    """One HW tile of the Dice partial-sum reduction + (last step only) weighted CE.

    seg_logit_ref / seg_tgt_ref : (BC, tile_mid, 128)  segmentation tile (bf16)
    cls_logit_ref               : (B_pad, K_pad) f32   classification logits
    cls_label_ref               : (B_pad, 1)   int32   labels (-1 = padded row)
    cls_w_ref                   : (1, K_pad)   f32     per-class CE weights
    dice_out_ref                : (BC_out, 384) f32    lane-wise partials:
                                                       [0:128)=inter, [128:256)=psum,
                                                       [256:384)=tsum
    ce_out_ref                  : (B_pad, 128) f32     lanes 0..1 = [w*nll, w]
    acc_ref                     : (BC_out, 384) f32    VMEM accumulator scratch
    """
    k = pl.program_id(1)

    # ---- init accumulator on the first HW step of each split ----------------
    @pl.when(k == 0)
    def _():
        acc_ref[...] = jnp.zeros_like(acc_ref)

    # ---- Dice lane-wise partial sums over this HW tile (no masking) ---------
    p = jax.nn.sigmoid(seg_logit_ref[...].astype(compute_dtype))
    t = seg_tgt_ref[...].astype(compute_dtype)

    # sum only over the sublane (middle) axis -> (BC, 128) lane partials;
    # the single cross-lane reduce is deferred to the wrapper.
    inter_p = jnp.sum((p * t).astype(jnp.float32), axis=1)
    psum_p = jnp.sum(p.astype(jnp.float32), axis=1)
    tsum_p = jnp.sum(t.astype(jnp.float32), axis=1)

    acc_ref[0:num_rows, 0:128] += inter_p
    acc_ref[0:num_rows, 128:256] += psum_p
    acc_ref[0:num_rows, 256:384] += tsum_p

    # ---- finalize + tiny class-weighted CE, once per split ------------------
    @pl.when(k == pl.num_programs(1) - 1)
    def _():
        dice_out_ref[...] = acc_ref[...]

        logits = cls_logit_ref[...].astype(jnp.float32)            # (B_pad, K_pad)
        labels = cls_label_ref[...]                                # (B_pad, 1) int32
        w = cls_w_ref[...].astype(jnp.float32)                     # (1, K_pad)

        lane = jax.lax.broadcasted_iota(jnp.int32, logits.shape, 1)
        class_valid = lane < num_cls
        logits = jnp.where(class_valid, logits, -1e30)             # padded classes

        m = jnp.max(logits, axis=-1, keepdims=True)
        lse = jnp.log(jnp.sum(jnp.exp(logits - m), axis=-1, keepdims=True)) + m
        logp = logits - lse

        onehot = ((lane == labels) & class_valid).astype(jnp.float32)
        nll = -jnp.sum(onehot * logp, axis=-1, keepdims=True)      # (B_pad, 1)
        wi = jnp.sum(onehot * w, axis=-1, keepdims=True)           # (B_pad, 1)

        ce_lane = jax.lax.broadcasted_iota(jnp.int32, ce_out_ref.shape, 1)
        ce_out_ref[...] = jnp.where(ce_lane == 0, wi * nll,
                          jnp.where(ce_lane == 1, wi, 0.0))


# ------------------------------ kernel wrapper ------------------------------ #

def fused_losses(seg_logits, seg_targets, cls_logits, cls_labels, cls_weights,
                 *, tile_bytes_budget=4 * 1024 * 1024, num_splits=2,
                 seg_compute_dtype=jnp.float32):
    """One fused pallas_call.

    Returns:
      dice_sums: (B, C, 3) f32 -- per-(batch, class) [intersection, pred_sum, tgt_sum]
      ce_rows:   (B, 2)    f32 -- per-sample [w_i * nll_i, w_i]
    """
    B, C, H, W = seg_logits.shape
    BC, HW = B * C, H * W
    Bc, K = cls_logits.shape

    # ---- segmentation view: (BC, M, 128); normally a free reshape, no pad ---
    if HW % 128 != 0:
        # Rare fallback: pad with "safe" constants so the kernel needs no masking.
        HW_pad = _round_up(HW, 128)
        seg_l = jnp.pad(seg_logits.reshape(BC, HW), ((0, 0), (0, HW_pad - HW)),
                        constant_values=-30.0)                     # sigmoid(-30) ~ 0
        seg_t = jnp.pad(seg_targets.reshape(BC, HW), ((0, 0), (0, HW_pad - HW)))
        HW = HW_pad
    else:
        seg_l, seg_t = seg_logits, seg_targets
    M = HW // 128
    seg_l = seg_l.reshape(BC, M, 128)
    seg_t = seg_t.reshape(BC, M, 128)

    itemsize = seg_l.dtype.itemsize
    max_mid = max(1, tile_bytes_budget // (BC * 128 * itemsize))
    tile_mid = _pick_tile_mid(M, max_mid)
    num_tiles = M // tile_mid

    splits = num_splits if (num_splits > 1 and num_tiles >= num_splits
                            and num_tiles % num_splits == 0) else 1
    tiles_per_split = num_tiles // splits

    BC_out = _round_up(BC, 8)
    B_pad = _round_up(Bc, 8)
    K_pad = _round_up(K, 128)

    # ---- tiny classification inputs (padding these is negligible) -----------
    cls_l = cls_logits.astype(jnp.float32)
    if (B_pad, K_pad) != (Bc, K):
        cls_l = jnp.pad(cls_l, ((0, B_pad - Bc), (0, K_pad - K)))
    lbl = cls_labels.astype(jnp.int32).reshape(Bc, 1)
    if B_pad != Bc:
        lbl = jnp.pad(lbl, ((0, B_pad - Bc), (0, 0)), constant_values=-1)
    w = cls_weights.astype(jnp.float32).reshape(1, K)
    if K_pad != K:
        w = jnp.pad(w, ((0, 0), (0, K_pad - K)))

    kernel = functools.partial(_fused_loss_kernel, num_rows=BC, num_cls=K,
                               compute_dtype=seg_compute_dtype)

    seg_spec = pl.BlockSpec((BC, tile_mid, 128),
                            lambda s, k: (0, s * tiles_per_split + k, 0))

    dice_part, ce_part = pl.pallas_call(
        kernel,
        out_shape=(
            jax.ShapeDtypeStruct((splits * BC_out, 384), jnp.float32),
            jax.ShapeDtypeStruct((splits * B_pad, 128), jnp.float32),
        ),
        grid=(splits, tiles_per_split),
        in_specs=[
            seg_spec,
            seg_spec,
            pl.BlockSpec((B_pad, K_pad), lambda s, k: (0, 0)),
            pl.BlockSpec((B_pad, 1), lambda s, k: (0, 0)),
            pl.BlockSpec((1, K_pad), lambda s, k: (0, 0)),
        ],
        out_specs=(
            pl.BlockSpec((BC_out, 384), lambda s, k: (s, 0)),
            pl.BlockSpec((B_pad, 128), lambda s, k: (s, 0)),
        ),
        scratch_shapes=[pltpu.VMEM((BC_out, 384), jnp.float32)],
        compiler_params=pltpu.CompilerParams(
            dimension_semantics=("parallel", "arbitrary"),
            vmem_limit_bytes=48 * 1024 * 1024,
        ),
    )(seg_l, seg_t, cls_l, lbl, w)

    # tiny final reductions: sum partials over splits and over the 128 lanes
    dice_sums = (dice_part.reshape(splits, BC_out, 3, 128)[:, :BC]
                 .sum(axis=(0, 3)).reshape(B, C, 3))
    ce_rows = ce_part[:Bc, :2]
    return dice_sums, ce_rows


# --------------------- MultiTaskLossWrapper.forward ------------------------ #

def multi_task_loss(log_vars, seg_logits, seg_targets, seg_weights,
                    cls_logits, cls_labels, cls_weights, **kw):
    """Mirrors MultiTaskLossWrapper.forward with concrete loss_fn choices."""
    eps = jnp.float32(1e-5)
    dice_sums, ce_rows = fused_losses(seg_logits, seg_targets,
                                      cls_logits, cls_labels, cls_weights, **kw)

    # ---- loss_fn[0]: weighted soft-Dice over C classes (batch-aggregated) ---
    inter = jnp.sum(dice_sums[..., 0], axis=0)          # (C,)
    psum = jnp.sum(dice_sums[..., 1], axis=0)
    tsum = jnp.sum(dice_sums[..., 2], axis=0)
    dice = (2.0 * inter + eps) / (psum + tsum + eps)
    per_class_loss = 1.0 - dice                          # (C,)
    loss1 = per_class_loss[0]
    loss2 = per_class_loss[1]
    loss3 = per_class_loss[2]
    seg_loss = jnp.sum(seg_weights.astype(jnp.float32) * per_class_loss)

    # ---- loss_fn[1]: class-weighted cross entropy (PyTorch weighted mean) ---
    mgmt_loss = jnp.sum(ce_rows[:, 0]) / jnp.sum(ce_rows[:, 1])

    # ---- uncertainty weighting (scalar glue, matches the torch ops) ---------
    lv0, lv1 = log_vars[0], log_vars[1]
    std_1 = jnp.exp(lv0) ** 0.5
    std_2 = jnp.exp(lv1) ** 0.5
    # torch.sum(x, -1) on a 0-d tensor is identity; same here (scalars).
    seg_loss_1 = 0.5 * jnp.exp(-lv0) * seg_loss + lv0
    mgmt_loss_1 = 0.5 * jnp.exp(-lv1) * mgmt_loss + lv1
    loss = jnp.mean(seg_loss_1 + mgmt_loss_1)

    return (loss, seg_loss, mgmt_loss, loss1, loss2, loss3,
            std_1, std_2, lv0, lv1)


# ---------------------------- pure-JAX reference ---------------------------- #

def _reference(log_vars, seg_logits, seg_targets, seg_weights,
               cls_logits, cls_labels, cls_weights):
    B, C, H, W = seg_logits.shape
    eps = jnp.float32(1e-5)
    p = jax.nn.sigmoid(seg_logits.astype(jnp.float32)).reshape(B, C, -1)
    t = seg_targets.astype(jnp.float32).reshape(B, C, -1)
    inter = jnp.sum(p * t, axis=(0, 2))
    psum = jnp.sum(p, axis=(0, 2))
    tsum = jnp.sum(t, axis=(0, 2))
    per_class = 1.0 - (2.0 * inter + eps) / (psum + tsum + eps)
    seg_loss = jnp.sum(seg_weights.astype(jnp.float32) * per_class)

    logp = jax.nn.log_softmax(cls_logits.astype(jnp.float32), axis=-1)
    nll = -jnp.take_along_axis(logp, cls_labels[:, None], axis=-1)[:, 0]
    wi = cls_weights.astype(jnp.float32)[cls_labels]
    mgmt_loss = jnp.sum(wi * nll) / jnp.sum(wi)

    lv0, lv1 = log_vars[0], log_vars[1]
    seg_loss_1 = 0.5 * jnp.exp(-lv0) * seg_loss + lv0
    mgmt_loss_1 = 0.5 * jnp.exp(-lv1) * mgmt_loss + lv1
    loss = jnp.mean(seg_loss_1 + mgmt_loss_1)
    return (loss, seg_loss, mgmt_loss, per_class[0], per_class[1], per_class[2],
            jnp.exp(lv0) ** 0.5, jnp.exp(lv1) ** 0.5, lv0, lv1)


# --------------------------------- main ------------------------------------ #

if __name__ == "__main__":
    key = jax.random.PRNGKey(0)
    k1, k2, k3, k4 = jax.random.split(key, 4)

    B, C, H, W = 2, 3, 16, 16   # segmentation: 3 output channels (e.g. WT/TC/ET)
    K = 2                       # MGMT classification: 2 classes

    # nn.Parameter(torch.tensor((0.0, 0.0))) -> deterministic zeros
    log_vars = jnp.zeros((2,), dtype=jnp.float32)

    # segmentation tensors stay in bf16 (kernel casts in VMEM)
    seg_logits = jax.random.normal(k1, (B, C, H, W), dtype=jnp.float32).astype(jnp.bfloat16)
    seg_targets = (jax.random.uniform(k2, (B, C, H, W)) > 0.5).astype(jnp.bfloat16)
    seg_weights = jnp.array([1.0, 1.0, 1.0], dtype=jnp.float32)

    cls_logits = jax.random.normal(k3, (B, K), dtype=jnp.float32)
    cls_labels = jax.random.randint(k4, (B,), 0, K, dtype=jnp.int32)
    cls_weights = jnp.array([1.0, 2.0], dtype=jnp.float32)

    # --- check 1: default config (single HW tile) ----------------------------
    out = multi_task_loss(log_vars, seg_logits, seg_targets, seg_weights,
                          cls_logits, cls_labels, cls_weights)
    out = jax.block_until_ready(out)
    ref = _reference(log_vars, seg_logits, seg_targets, seg_weights,
                     cls_logits, cls_labels, cls_weights)
    ref = jax.block_until_ready(ref)
    np.testing.assert_allclose(np.array([float(o) for o in out]),
                               np.array([float(r) for r in ref]),
                               rtol=2e-3, atol=2e-3)

    # --- check 2: multi HW-tile accumulation + 2-way parallel split path -----
    Hs = Ws = 64
    seg_logits2 = jax.random.normal(k1, (B, C, Hs, Ws), dtype=jnp.float32).astype(jnp.bfloat16)
    seg_targets2 = (jax.random.uniform(k2, (B, C, Hs, Ws)) > 0.5).astype(jnp.bfloat16)
    out2 = multi_task_loss(log_vars, seg_logits2, seg_targets2, seg_weights,
                           cls_logits, cls_labels, cls_weights,
                           tile_bytes_budget=B * C * 8 * 128 * 2, num_splits=2)
    out2 = jax.block_until_ready(out2)
    ref2 = _reference(log_vars, seg_logits2, seg_targets2, seg_weights,
                      cls_logits, cls_labels, cls_weights)
    ref2 = jax.block_until_ready(ref2)
    np.testing.assert_allclose(np.array([float(o) for o in out2]),
                               np.array([float(r) for r in ref2]),
                               rtol=2e-3, atol=2e-3)

    print("KERNEL_OK")
</pallas_src>

<mosaic_0001>
module attributes {stable_mosaic.version = 11 : i64} {
  func.func @_fused_loss_kernel(%arg0: i32, %arg1: i32, %arg2: memref<6x2x128xbf16, #tpu.memory_space<vmem>>, %arg3: memref<6x2x128xbf16, #tpu.memory_space<vmem>>, %arg4: memref<8x128xf32, #tpu.memory_space<vmem>>, %arg5: memref<8x1xi32, #tpu.memory_space<vmem>>, %arg6: memref<1x128xf32, #tpu.memory_space<vmem>>, %arg7: memref<8x384xf32, #tpu.memory_space<vmem>>, %arg8: memref<8x128xf32, #tpu.memory_space<vmem>>, %arg9: memref<8x384xf32, #tpu.memory_space<vmem>>) attributes {dimension_semantics = [#tpu.dimension_semantics<parallel>, #tpu.dimension_semantics<arbitrary>], iteration_bounds = array<i64: 1, 1>, scalar_prefetch = 0 : i64, scratch_operands = 1 : i64, tpu.core_type = #tpu.core_type<tc>, window_params = [{transform_indices = @transform_0, window_bounds = array<i64: 6, 2, 128>}, {transform_indices = @transform_1, window_bounds = array<i64: 6, 2, 128>}, {pipeline_mode = #tpu.pipeline_mode<synchronous>, transform_indices = @transform_2, window_bounds = array<i64: 8, 128>}, {pipeline_mode = #tpu.pipeline_mode<synchronous>, transform_indices = @transform_3, window_bounds = array<i64: 8, 1>}, {pipeline_mode = #tpu.pipeline_mode<synchronous>, transform_indices = @transform_4, window_bounds = array<i64: 1, 128>}, {transform_indices = @transform_5, window_bounds = array<i64: 8, 384>}, {transform_indices = @transform_6, window_bounds = array<i64: 8, 128>}]} {
    %c0_i32 = arith.constant 0 : i32
    %0 = arith.cmpi eq, %arg1, %c0_i32 : i32
    %1 = arith.extui %0 : i1 to i32
    %c0_i32_0 = arith.constant 0 : i32
    %2 = arith.cmpi ne, %1, %c0_i32_0 : i32
    scf.if %2 {
      %cst_21 = arith.constant 0.000000e+00 : f32
      %28 = vector.broadcast %cst_21 : f32 to vector<8x384xf32>
      %c0_22 = arith.constant 0 : index
      %c0_23 = arith.constant 0 : index
      %29 = vector.load %arg9[%c0_22, %c0_23] : memref<8x384xf32, #tpu.memory_space<vmem>>, vector<8x384xf32>
      tpu.vector_store %arg9[%c0_22, %c0_23], %28 {strides = array<i32>} : memref<8x384xf32, #tpu.memory_space<vmem>>, vector<8x384xf32>,
    } else {
    }
    %c0 = arith.constant 0 : index
    %c0_1 = arith.constant 0 : index
    %c0_2 = arith.constant 0 : index
    %3 = vector.load %arg2[%c0, %c0_1, %c0_2] : memref<6x2x128xbf16, #tpu.memory_space<vmem>>, vector<6x2x128xbf16>
    %4 = arith.extf %3 : vector<6x2x128xbf16> to vector<6x2x128xf32>
    %5 = arith.negf %4 : vector<6x2x128xf32>
    %6 = math.exp %5 : vector<6x2x128xf32>
    %cst = arith.constant 1.000000e+00 : f32
    %7 = vector.broadcast %cst : f32 to vector<6x2x128xf32>
    %8 = arith.addf %7, %6 : vector<6x2x128xf32>
    %9 = arith.divf %7, %8 : vector<6x2x128xf32>
    %c0_3 = arith.constant 0 : index
    %c0_4 = arith.constant 0 : index
    %c0_5 = arith.constant 0 : index
    %10 = vector.load %arg3[%c0_3, %c0_4, %c0_5] : memref<6x2x128xbf16, #tpu.memory_space<vmem>>, vector<6x2x128xbf16>
    %11 = arith.extf %10 : vector<6x2x128xbf16> to vector<6x2x128xf32>
    %12 = arith.mulf %9, %11 : vector<6x2x128xf32>
    %cst_6 = arith.constant dense<0.000000e+00> : vector<6x128xf32>
    %13 = vector.multi_reduction <add>, %12, %cst_6 [1] : vector<6x2x128xf32> to vector<6x128xf32>
    %cst_7 = arith.constant dense<0.000000e+00> : vector<6x128xf32>
    %14 = vector.multi_reduction <add>, %9, %cst_7 [1] : vector<6x2x128xf32> to vector<6x128xf32>
    %cst_8 = arith.constant dense<0.000000e+00> : vector<6x128xf32>
    %15 = vector.multi_reduction <add>, %11, %cst_8 [1] : vector<6x2x128xf32> to vector<6x128xf32>
    %c0_9 = arith.constant 0 : index
    %c0_10 = arith.constant 0 : index
    %16 = vector.load %arg9[%c0_9, %c0_10] : memref<8x384xf32, #tpu.memory_space<vmem>>, vector<6x128xf32>
    %17 = arith.addf %16, %13 : vector<6x128xf32>
    %c0_11 = arith.constant 0 : index
    %c0_12 = arith.constant 0 : index
    %18 = vector.load %arg9[%c0_11, %c0_12] : memref<8x384xf32, #tpu.memory_space<vmem>>, vector<6x128xf32>
    tpu.vector_store %arg9[%c0_11, %c0_12], %17 {strides = array<i32>} : memref<8x384xf32, #tpu.memory_space<vmem>>, vector<6x128xf32>,
    %c0_13 = arith.constant 0 : index
    %c128 = arith.constant 128 : index
    %19 = vector.load %arg9[%c0_13, %c128] : memref<8x384xf32, #tpu.memory_space<vmem>>, vector<6x128xf32>
    %20 = arith.addf %19, %14 : vector<6x128xf32>
    %c0_14 = arith.constant 0 : index
    %c128_15 = arith.constant 128 : index
    %21 = vector.load %arg9[%c0_14, %c128_15] : memref<8x384xf32, #tpu.memory_space<vmem>>, vector<6x128xf32>
    tpu.vector_store %arg9[%c0_14, %c128_15], %20 {strides = array<i32>} : memref<8x384xf32, #tpu.memory_space<vmem>>, vector<6x128xf32>,
    %c0_16 = arith.constant 0 : index
    %c256 = arith.constant 256 : index
    %22 = vector.load %arg9[%c0_16, %c256] : memref<8x384xf32, #tpu.memory_space<vmem>>, vector<6x128xf32>
    %23 = arith.addf %22, %15 : vector<6x128xf32>
    %c0_17 = arith.constant 0 : index
    %c256_18 = arith.constant 256 : index
    %24 = vector.load %arg9[%c0_17, %c256_18] : memref<8x384xf32, #tpu.memory_space<vmem>>, vector<6x128xf32>
    tpu.vector_store %arg9[%c0_17, %c256_18], %23 {strides = array<i32>} : memref<8x384xf32, #tpu.memory_space<vmem>>, vector<6x128xf32>,
    %c0_i32_19 = arith.constant 0 : i32
    %25 = arith.cmpi eq, %arg1, %c0_i32_19 : i32
    %26 = arith.extui %25 : i1 to i32
    %c0_i32_20 = arith.constant 0 : i32
    %27 = arith.cmpi ne, %26, %c0_i32_20 : i32
    scf.if %27 {
      %c0_21 = arith.constant 0 : index
      %c0_22 = arith.constant 0 : index
      %28 = vector.load %arg9[%c0_21, %c0_22] : memref<8x384xf32, #tpu.memory_space<vmem>>, vector<8x384xf32>
      %c0_23 = arith.constant 0 : index
      %c0_24 = arith.constant 0 : index
      %29 = vector.load %arg7[%c0_23, %c0_24] : memref<8x384xf32, #tpu.memory_space<vmem>>, vector<8x384xf32>
      tpu.vector_store %arg7[%c0_23, %c0_24], %28 {strides = array<i32>} : memref<8x384xf32, #tpu.memory_space<vmem>>, vector<8x384xf32>,
      %c0_25 = arith.constant 0 : index
      %c0_26 = arith.constant 0 : index
      %30 = vector.load %arg4[%c0_25, %c0_26] : memref<8x128xf32, #tpu.memory_space<vmem>>, vector<8x128xf32>
      %c0_27 = arith.constant 0 : index
      %c0_28 = arith.constant 0 : index
      %31 = vector.load %arg5[%c0_27, %c0_28] : memref<8x1xi32, #tpu.memory_space<vmem>>, vector<8x1xi32>
      %c0_29 = arith.constant 0 : index
      %c0_30 = arith.constant 0 : index
      %32 = vector.load %arg6[%c0_29, %c0_30] : memref<1x128xf32, #tpu.memory_space<vmem>>, vector<1x128xf32>
      %33 = tpu.iota {dimensions = array<i32: 1>} : vector<8x128xi32>
      %c2_i32 = arith.constant 2 : i32
      %34 = vector.broadcast %c2_i32 : i32 to vector<8x128xi32>
      %35 = arith.cmpi slt, %33, %34 : vector<8x128xi32>
      %cst_31 = arith.constant -1.000000e+30 : f32
      %36 = vector.broadcast %cst_31 : f32 to vector<8x128xf32>
      %37 = arith.select %35, %30, %36 : vector<8x128xi1>, vector<8x128xf32>
      %cst_32 = arith.constant dense<0xFF800000> : vector<8xf32>
      %38 = vector.multi_reduction <maximumf>, %37, %cst_32 [1] : vector<8x128xf32> to vector<8xf32>
      %39 = vector.shape_cast %38 : vector<8xf32> to vector<8x1xf32>
      %40 = vector.broadcast %39 : vector<8x1xf32> to vector<8x128xf32>
      %41 = arith.subf %37, %40 : vector<8x128xf32>
      %42 = math.exp %41 : vector<8x128xf32>
      %cst_33 = arith.constant dense<0.000000e+00> : vector<8xf32>
      %43 = vector.multi_reduction <add>, %42, %cst_33 [1] : vector<8x128xf32> to vector<8xf32>
      %44 = vector.shape_cast %43 : vector<8xf32> to vector<8x1xf32>
      %45 = math.log %44 : vector<8x1xf32>
      %46 = arith.addf %45, %39 : vector<8x1xf32>
      %47 = vector.broadcast %46 : vector<8x1xf32> to vector<8x128xf32>
      %48 = arith.subf %37, %47 : vector<8x128xf32>
      %49 = vector.broadcast %31 : vector<8x1xi32> to vector<8x128xi32>
      %50 = arith.cmpi eq, %33, %49 : vector<8x128xi32>
      %51 = arith.andi %50, %35 : vector<8x128xi1>
      %52 = arith.extui %51 : vector<8x128xi1> to vector<8x128xi32>
      %53 = arith.sitofp %52 : vector<8x128xi32> to vector<8x128xf32>
      %54 = arith.mulf %53, %48 : vector<8x128xf32>
      %cst_34 = arith.constant dense<0.000000e+00> : vector<8xf32>
      %55 = vector.multi_reduction <add>, %54, %cst_34 [1] : vector<8x128xf32> to vector<8xf32>
      %56 = vector.shape_cast %55 : vector<8xf32> to vector<8x1xf32>
      %cst_35 = arith.constant 0.000000e+00 : f32
      %57 = vector.broadcast %cst_35 : f32 to vector<8x1xf32>
      %58 = arith.subf %57, %56 : vector<8x1xf32>
      %59 = vector.broadcast %32 : vector<1x128xf32> to vector<8x128xf32>
      %60 = arith.mulf %53, %59 : vector<8x128xf32>
      %cst_36 = arith.constant dense<0.000000e+00> : vector<8xf32>
      %61 = vector.multi_reduction <add>, %60, %cst_36 [1] : vector<8x128xf32> to vector<8xf32>
      %62 = vector.shape_cast %61 : vector<8xf32> to vector<8x1xf32>
      %63 = tpu.iota {dimensions = array<i32: 1>} : vector<8x128xi32>
      %c0_i32_37 = arith.constant 0 : i32
      %64 = vector.broadcast %c0_i32_37 : i32 to vector<8x128xi32>
      %65 = arith.cmpi eq, %63, %64 : vector<8x128xi32>
      %66 = arith.mulf %62, %58 : vector<8x1xf32>
      %c1_i32 = arith.constant 1 : i32
      %67 = vector.broadcast %c1_i32 : i32 to vector<8x128xi32>
      %68 = arith.cmpi eq, %63, %67 : vector<8x128xi32>
      %cst_38 = arith.constant 0.000000e+00 : f32
      %69 = vector.shape_cast %62 : vector<8x1xf32> to vector<8x1xf32>
      %70 = vector.broadcast %69 : vector<8x1xf32> to vector<8x128xf32>
      %71 = vector.broadcast %cst_38 : f32 to vector<8x128xf32>
      %72 = arith.select %68, %70, %71 : vector<8x128xi1>, vector<8x128xf32>
      %73 = vector.shape_cast %66 : vector<8x1xf32> to vector<8x1xf32>
      %74 = vector.broadcast %73 : vector<8x1xf32> to vector<8x128xf32>
      %75 = arith.select %65, %74, %72 : vector<8x128xi1>, vector<8x128xf32>
      %c0_39 = arith.constant 0 : index
      %c0_40 = arith.constant 0 : index
      %76 = vector.load %arg8[%c0_39, %c0_40] : memref<8x128xf32, #tpu.memory_space<vmem>>, vector<8x128xf32>
      tpu.vector_store %arg8[%c0_39, %c0_40], %75 {strides = array<i32>} : memref<8x128xf32, #tpu.memory_space<vmem>>, vector<8x128xf32>,
    } else {
    }
    return
  }
  func.func @transform_0(%arg0: i32, %arg1: i32) -> (i32, i32, i32) {
    %c1_i32 = arith.constant 1 : i32
    %0 = arith.muli %arg0, %c1_i32 : i32
    %1 = arith.addi %0, %arg1 : i32
    %c0_i32 = arith.constant 0 : i32
    %c0_i32_0 = arith.constant 0 : i32
    %c0_i32_1 = arith.constant 0 : i32
    return %c0_i32, %1, %c0_i32_0 : i32, i32, i32
  }
  func.func @transform_1(%arg0: i32, %arg1: i32) -> (i32, i32, i32) {
    %c1_i32 = arith.constant 1 : i32
    %0 = arith.muli %arg0, %c1_i32 : i32
    %1 = arith.addi %0, %arg1 : i32
    %c0_i32 = arith.constant 0 : i32
    %c0_i32_0 = arith.constant 0 : i32
    %c0_i32_1 = arith.constant 0 : i32
    return %c0_i32, %1, %c0_i32_0 : i32, i32, i32
  }
  func.func @transform_2(%arg0: i32, %arg1: i32) -> (i32, i32) {
    %c0_i32 = arith.constant 0 : i32
    %c0_i32_0 = arith.constant 0 : i32
    %c0_i32_1 = arith.constant 0 : i32
    return %c0_i32, %c0_i32_0 : i32, i32
  }
  func.func @transform_3(%arg0: i32, %arg1: i32) -> (i32, i32) {
    %c0_i32 = arith.constant 0 : i32
    %c0_i32_0 = arith.constant 0 : i32
    %c0_i32_1 = arith.constant 0 : i32
    return %c0_i32, %c0_i32_0 : i32, i32
  }
  func.func @transform_4(%arg0: i32, %arg1: i32) -> (i32, i32) {
    %c0_i32 = arith.constant 0 : i32
    %c0_i32_0 = arith.constant 0 : i32
    %c0_i32_1 = arith.constant 0 : i32
    return %c0_i32, %c0_i32_0 : i32, i32
  }
  func.func @transform_5(%arg0: i32, %arg1: i32) -> (i32, i32) {
    %c0_i32 = arith.constant 0 : i32
    %c0_i32_0 = arith.constant 0 : i32
    return %arg0, %c0_i32 : i32, i32
  }
  func.func @transform_6(%arg0: i32, %arg1: i32) -> (i32, i32) {
    %c0_i32 = arith.constant 0 : i32
    %c0_i32_0 = arith.constant 0 : i32
    return %arg0, %c0_i32 : i32, i32
  }
}

</mosaic_0001>

<bundles_post_ra>
// kernel: tpu_custom_call.1
= control target key start
LH: loop header
LB: loop body
LE: loop exit
PB: predicated region body
PF: predicated region fallthrough
CT: control target
= control target key end

     0   :  { %12 = vsyncpa [#allocation4], 0  ;;  %s711_s0 = inlined_call_operand.vmem [shape: bf16[6,2,128], index: 0, kind: input, shape index: {}]   ;;  %s712_s1 = inlined_call_operand.hbm [shape: bf16[6,2,128], index: 1, kind: input, shape index: {}]   ;;  %s713_s2 = inlined_call_operand.vmem [shape: f32[8,128], index: 2, kind: input, shape index: {}]   ;;  %s714_s3 = inlined_call_operand.vmem [shape: s32[8,1], index: 3, kind: input, shape index: {}]   ;;  %s715_s4 = inlined_call_operand.vmem [shape: f32[1,128], index: 4, kind: input, shape index: {}]   ;;  %s716_s5 = inlined_call_operand.hbm [shape: f32[8,384], index: 5, kind: output, shape index: {0}]   ;;  %s717_s6 = inlined_call_operand.hbm [shape: f32[8,128], index: 6, kind: output, shape index: {1}]  }
   0x1   :  { %13 = vsyncpa [#allocation5], 0 }
   0x2   :  { %14 = vsyncpa [#allocation8], 0  ;;  %s508_s21 = smov [#allocation3]   ;;  %s436_s25 = scalar_lea.hbm %s712_s1, 96 }
   0x3   :  { %s30_s22 = sshll.u32 %s508_s21, 4  ;;  %p437_p0 = scmp.ne.s32.totalorder %s712_s1, %s436_s25  ;;  %s31_s22 = int_to_ptr.vmem [resolvable:$true] %s30_s22 }
   0x4   :  { %p440_p1 = scmp.lt.u32.totalorder %s436_s25, %s712_s1 }
   0x6   :  { %p442_p2 = pnand %p440_p1, %p437_p0 }
   0x8   :  { %445 = shalt.err (!%p442_p2)
}
   0x9   :  { %s446_s30 = scalar_lea.vmem %s31_s22, 96  ;;  %p451_p4 = scmp.lt.s32.totalorder %s31_s22, %s31_s22 }
   0xa   :  { %p447_p3 = scmp.ne.s32.totalorder %s31_s22, %s446_s30  ;;  %p452_p5 = scmp.lt.s32.totalorder %s446_s30, %s446_s30 }
   0xc   :  { %p453_p6 = por %p452_p5, %p451_p4 }
   0xe   :  { %p454_p7 = pnand %p453_p6, %p447_p3 }
  0x10   :  { %457 = shalt.err (!%p454_p7)
}
  0x11   :  { %s509_s7 = smov 16   ;;  %s510_s8 = smov 1  }
  0x12   :  { %36 = dma.hbm_to_vmem [thread:$0]  %s712_s1, 96, %s31_s22, [#allocation4], %s509_s7, %s509_s7, %s510_s8  }
  0x13   :  { %502 = dma.done.wait [#allocation4], 96  }
  0x14   :  { %503 = vsyncadd [#allocation4], 4294967200  ;;  %v318_v0 = vlaneseq  ;;  %v315_v2 = vld [vmem:[%s713_s2] sm:$0xff]  ;;  %v511_v5 = vmov 0   ;;  %v512_v12 = vmov 0.0   ;;  %vm129_vm3 = vcmask 1041408  }
  0x15   :  { %v316_v4 = vld [vmem:[%s714_s3] sm:$0xff]  ;;  %406 = vset.pattern.permute.xlu1 %v511_v5  ;;  %407 = vset.pattern.permute.xlu0 %v511_v5  ;;  %60 = vst [vmem:[#allocation2] sm:$0xff] %v512_v12  ;;  %61 = vst [vmem:[#allocation2 + $0x8] sm:$0xff] %v512_v12  ;;  %v607_v27 = vld [vmem:[#allocation3] sm:$0x1]  ;;  %vm263_vm4 = vcmask 1041409  }
  0x16   :  { %v562_v1 = vand.u32 127, %v318_v0  ;;  %334 = vperm.xlu1 %406, %v316_v4   ;;  %v398_v11 = vld [vmem:[%s715_s4] ss:$0 sm:$0xff]  ;;  %62 = vst [vmem:[#allocation2 + $0x10] sm:$0xff] %v512_v12  ;;  %v64_v14 = vld [vmem:[%s711_s0 + $0x1] sm:$0x1]  ;;  %v117_v35 = vunpack.c.l.bf16 %v607_v27 }
  0x17   :  { %v63_v13 = vld [vmem:[%s711_s0] sm:$0x1]  ;;  %v65_v15 = vld [vmem:[%s711_s0 + $0x2] sm:$0x1]  ;;  %v66_v18 = vld [vmem:[%s711_s0 + $0x3] sm:$0x1]  ;;  %v70_v20 = vunpack.c.l.bf16 %v64_v14 }
  0x18   :  { %vm320_vm0 = vcmp.lt.s32.totalorder %v562_v1, 2  ;;  %v69_v16 = vunpack.c.l.bf16 %v63_v13  ;;  %v67_v19 = vld [vmem:[%s711_s0 + $0x4] sm:$0x1]  ;;  %v71_v21 = vunpack.c.l.bf16 %v65_v15  ;;  %v68_v23 = vld [vmem:[%s711_s0 + $0x5] sm:$0x1]  ;;  %v72_v24 = vunpack.c.l.bf16 %v66_v18  ;;  %s513_s0 = smov [#allocation6]  }
  0x19   :  { %v570_v3 = vsel %vm320_vm0, %v315_v2, -1e+30  ;;  %v73_v25 = vunpack.c.l.bf16 %v67_v19  ;;  %v74_v28 = vunpack.c.l.bf16 %v68_v23  ;;  %v392_v29 = vmul.f32 -1.442695, %v70_v20  ;;  %v609_v31 = vld [vmem:[#allocation3 + $0x1] sm:$0x1] }
  0x1a   :  { %322 = vmax.xlane.f32.xlu0 %v570_v3  ;;  %v391_v26 = vmul.f32 -1.442695, %v69_v16  ;;  %v393_v30 = vmul.f32 -1.442695, %v71_v21  ;;  %v394_v32 = vmul.f32 -1.442695, %v72_v24  ;;  %v118_v39 = vunpack.c.l.bf16 %v609_v31 }
  0x1b   :  { %v395_v33 = vmul.f32 -1.442695, %v73_v25  ;;  %v611_v34 = vld [vmem:[#allocation3 + $0x2] sm:$0x1]  ;;  %v396_v36 = vmul.f32 -1.442695, %v74_v28 }
  0x1c   :  { %v614_v37 = vld [vmem:[#allocation3 + $0x3] sm:$0x1]  ;;  %v616_v38 = vld [vmem:[#allocation3 + $0x4] sm:$0x1]  ;;  %v119_v40 = vunpack.c.l.bf16 %v611_v34  ;;  %v620_v41 = vld [vmem:[#allocation3 + $0x5] sm:$0x1] }
  0x1d   :  { %v120_v42 = vunpack.c.l.bf16 %v614_v37  ;;  %v121_v43 = vunpack.c.l.bf16 %v616_v38  ;;  %v214_v44 = vsel %vm129_vm3, %v117_v35, 0.0  ;;  %v122_v45 = vunpack.c.l.bf16 %v620_v41  ;;  %s365_s25 = sshll.u32 %s513_s0, 4  ;;  %s366_s25 = int_to_ptr.vmem [resolvable:$true] %s365_s25 }
  0x1e   :  { %v215_v46 = vrot.slane %v214_v44, 4  ;;  %v221_v47 = vsel %vm129_vm3, %v118_v39, 0.0  ;;  %v228_v49 = vsel %vm129_vm3, %v119_v40, 0.0  ;;  %vm265_vm5 = vcmask 1042434   ;;  %s458_s26 = scalar_lea.vmem %s366_s25, 384  ;;  %p463_p9 = scmp.lt.s32.totalorder %s366_s25, %s366_s25 }
  0x1f   :  { %v222_v48 = vrot.slane %v221_v47, 4  ;;  %v235_v50 = vsel %vm129_vm3, %v120_v42, 0.0  ;;  %v229_v52 = vrot.slane %v228_v49, 4  ;;  %v242_v55 = vsel %vm129_vm3, %v121_v43, 0.0  ;;  %p459_p8 = scmp.ne.s32.totalorder %s366_s25, %s458_s26  ;;  %p464_p10 = scmp.lt.s32.totalorder %s458_s26, %s458_s26 }
  0x20   :  { %v216_v51 = vadd.f32 %v215_v46, %v214_v44  ;;  %v236_v53 = vrot.slane %v235_v50, 4  ;;  %v249_v56 = vsel %vm129_vm3, %v122_v45, 0.0  ;;  %v243_v60 = vrot.slane %v242_v55, 4 }
  0x21   :  { %v223_v54 = vadd.f32 %v222_v48, %v221_v47  ;;  %v230_v58 = vadd.f32 %v229_v52, %v228_v49  ;;  %v250_v62 = vrot.slane %v249_v56, 4  ;;  %vm267_vm6 = vcmask 1043459   ;;  %p465_p11 = por %p464_p10, %p463_p9 }
  0x22   :  { %v217_v57 = vrot.slane %v216_v51, 2  ;;  %v237_v59 = vadd.f32 %v236_v53, %v235_v50  ;;  %v244_v4 = vadd.f32 %v243_v60, %v242_v55  ;;  %vm269_vm7 = vcmask 1044484  }
  0x23   :  { %v224_v61 = vrot.slane %v223_v54, 2  ;;  %v231_v0 = vrot.slane %v230_v58, 2  ;;  %vm271_vm8 = vcmask 1045509   ;;  %p466_p12 = pnand %p465_p11, %p459_p8 }
  0x24   :  { %v218_v63 = vadd.f32 %v217_v57, %v216_v51  ;;  %v238_v2 = vrot.slane %v237_v59, 2  ;;  %v245_v18 = vrot.slane %v244_v4, 2 }
  0x26   :  { %v239_v13 = vadd.f32 %v238_v2, %v237_v59 }
  0x28   :  { %v240_v28 = vrot.slane %v239_v13, 1 }
  0x2a   :  { %v241_v44 = vadd.f32 %v240_v28, %v239_v13 }
  0x95   :  { %v335_v10 = vpop.permute.xlu1 %334 }
  0x96   :  { %vm336_vm1 = vcmp.eq.s32.totalorder %v562_v1, %v335_v10 }
  0x97   :  { %vm337_vm2 = vmand %vm336_vm1, %vm320_vm0 }
  0x98   :  { %v595_v17 = vsel %vm337_vm2, 1.0, %v512_v12  ;;  %v232_v12 = vadd.f32 %v231_v0, %v230_v58 }
  0x99   :  { %v350_v22 = vmul.f32 %v398_v11, %v595_v17  ;;  %v219_v11 = vrot.slane %v218_v63, 1 }
  0x9a   :  { %v233_v23 = vrot.slane %v232_v12, 1 }
  0xa7   :  { %v576_v6 = vpop.xlane.xlu0 %322 }
  0xa8   :  { %v324_v7 = vsub.f32 %v570_v3, %v576_v6 }
  0xaa   :  { %v325_v8 = vmul.f32 1.442695, %v324_v7  ;;  %v225_v7 = vadd.f32 %v224_v61, %v223_v54  ;;  %v291_v54 = vld [vmem:[#allocation2 + $0x10] sm:$0x3f] }
  0xac   :  { %408 = vpow2.f32 %v325_v8  ;;  %v251_v8 = vadd.f32 %v250_v62, %v249_v56  ;;  %v226_v16 = vrot.slane %v225_v7, 1 }
  0xad   :  { %410 = vpow2.f32 %v391_v26 }
  0xae   :  { %412 = vpow2.f32 %v392_v29  ;;  %v252_v19 = vrot.slane %v251_v8, 2  ;;  %v227_v26 = vadd.f32 %v226_v16, %v225_v7 }
  0xaf   :  { %414 = vpow2.f32 %v393_v30 }
  0xb0   :  { %416 = vpow2.f32 %v394_v32  ;;  %v234_v32 = vadd.f32 %v233_v23, %v232_v12  ;;  %v253_v46 = vadd.f32 %v252_v19, %v251_v8 }
  0xb1   :  { %418 = vpow2.f32 %v395_v33  ;;  %v246_v33 = vadd.f32 %v245_v18, %v244_v4 }
  0xb2   :  { %420 = vpow2.f32 %v396_v36  ;;  %v254_v49 = vrot.slane %v253_v46, 1 }
  0xb3   :  { %v247_v47 = vrot.slane %v246_v33, 1 }
  0xb4   :  { %v255_v53 = vadd.f32 %v254_v49, %v253_v46 }
  0xb5   :  { %v248_v51 = vadd.f32 %v247_v47, %v246_v33 }
  0xb6   :  { %v409_v9 = vpop.eup %408 }
  0xb7   :  { %327 = vadd.xlane.f32.xlu0 %v409_v9  ;;  %v411_v5 = vpop.eup %410 }
  0xb8   :  { %v413_v9 = vpop.eup %412  ;;  %v93_v10 = vadd.f32 1.0, %v411_v5 }
  0xb9   :  { %v415_v14 = vpop.eup %414  ;;  %v94_v15 = vadd.f32 1.0, %v413_v9 }
  0xba   :  { %v417_v20 = vpop.eup %416  ;;  %v95_v21 = vadd.f32 1.0, %v415_v14  ;;  %422 = vrcp.f32 %v93_v10 }
  0xbb   :  { %351 = vadd.xlane.f32.xlu0 %v350_v22  ;;  %v220_v22 = vadd.f32 %v219_v11, %v218_v63  ;;  %v419_v24 = vpop.eup %418  ;;  %v96_v25 = vadd.f32 1.0, %v417_v20  ;;  %424 = vrcp.f32 %v94_v15 }
  0xbc   :  { %v421_v29 = vpop.eup %420  ;;  %v97_v30 = vadd.f32 1.0, %v419_v24  ;;  %426 = vrcp.f32 %v95_v21 }
  0xbd   :  { %v98_v36 = vadd.f32 1.0, %v421_v29  ;;  %428 = vrcp.f32 %v96_v25  ;;  %v298_v48 = vsel %vm263_vm4, %v227_v26, %v220_v22 }
  0xbe   :  { %430 = vrcp.f32 %v97_v30  ;;  %v299_v50 = vsel %vm265_vm5, %v234_v32, %v298_v48 }
  0xbf   :  { %432 = vrcp.f32 %v98_v36  ;;  %v300_v52 = vsel %vm267_vm6, %v241_v44, %v299_v50 }
  0xc0   :  { %v301_v55 = vsel %vm269_vm7, %v248_v51, %v300_v52 }
  0xc1   :  { %v302_v56 = vsel %vm271_vm8, %v255_v53, %v301_v55 }
  0xc2   :  { %v304_v58 = vadd.f32 %v302_v56, %v291_v54 }
  0xc4   :  { %v423_v57 = vpop.eup %422  ;;  %305 = vst [vmem:[#allocation2 + $0x10] sm:$0x3f] %v304_v58 }
  0xc5   :  { %v425_v59 = vpop.eup %424  ;;  %v123_v60 = vmul.f32 %v423_v57, %v117_v35  ;;  %v172_v61 = vsel %vm129_vm3, %v423_v57, 0.0 }
  0xc6   :  { %v427_v62 = vpop.eup %426  ;;  %v124_v63 = vmul.f32 %v425_v59, %v118_v39  ;;  %v173_v0 = vrot.slane %v172_v61, 4  ;;  %v179_v2 = vsel %vm129_vm3, %v425_v59, 0.0 }
  0xc7   :  { %v429_v4 = vpop.eup %428  ;;  %v125_v5 = vmul.f32 %v427_v62, %v119_v40  ;;  %v130_v7 = vsel %vm129_vm3, %v123_v60, 0.0  ;;  %v180_v8 = vrot.slane %v179_v2, 4  ;;  %v186_v33 = vsel %vm129_vm3, %v427_v62, 0.0 }
  0xc8   :  { %v431_v9 = vpop.eup %430  ;;  %v126_v27 = vmul.f32 %v429_v4, %v120_v42  ;;  %v131_v35 = vrot.slane %v130_v7, 4  ;;  %v137_v10 = vsel %vm129_vm3, %v124_v63, 0.0  ;;  %v174_v31 = vadd.f32 %v173_v0, %v172_v61 }
  0xc9   :  { %v433_v39 = vpop.eup %432  ;;  %v127_v11 = vmul.f32 %v431_v9, %v121_v43  ;;  %v138_v12 = vrot.slane %v137_v10, 4  ;;  %v144_v13 = vsel %vm129_vm3, %v125_v5, 0.0  ;;  %v181_v34 = vadd.f32 %v180_v8, %v179_v2 }
  0xca   :  { %v128_v40 = vmul.f32 %v433_v39, %v122_v45  ;;  %v132_v14 = vadd.f32 %v131_v35, %v130_v7  ;;  %v145_v15 = vrot.slane %v144_v13, 4  ;;  %v151_v37 = vsel %vm129_vm3, %v126_v27, 0.0 }
  0xcb   :  { %v139_v42 = vadd.f32 %v138_v12, %v137_v10  ;;  %v152_v16 = vrot.slane %v151_v37, 4  ;;  %v158_v18 = vsel %vm129_vm3, %v127_v11, 0.0  ;;  %v175_v19 = vrot.slane %v174_v31, 2 }
  0xcc   :  { %v133_v20 = vrot.slane %v132_v14, 2  ;;  %v146_v21 = vadd.f32 %v145_v15, %v144_v13  ;;  %v159_v38 = vrot.slane %v158_v18, 4  ;;  %v165_v43 = vsel %vm129_vm3, %v128_v40, 0.0 }
  0xcd   :  { %v140_v22 = vrot.slane %v139_v42, 2  ;;  %v153_v23 = vadd.f32 %v152_v16, %v151_v37  ;;  %v166_v24 = vrot.slane %v165_v43, 4  ;;  %v176_v25 = vadd.f32 %v175_v19, %v174_v31 }
  0xce   :  { %v134_v41 = vadd.f32 %v133_v20, %v132_v14  ;;  %v147_v45 = vrot.slane %v146_v21, 2  ;;  %v160_v26 = vadd.f32 %v159_v38, %v158_v18  ;;  %v182_v28 = vrot.slane %v181_v34, 2 }
  0xcf   :  { %v141_v29 = vadd.f32 %v140_v22, %v139_v42  ;;  %v154_v30 = vrot.slane %v153_v23, 2  ;;  %v167_v32 = vadd.f32 %v166_v24, %v165_v43  ;;  %v177_v54 = vrot.slane %v176_v25, 1  ;;  %v256_v42 = vld [vmem:[#allocation2] sm:$0x3f] }
  0xd0   :  { %v135_v36 = vrot.slane %v134_v41, 1  ;;  %v148_v44 = vadd.f32 %v147_v45, %v146_v21  ;;  %v161_v46 = vrot.slane %v160_v26, 2  ;;  %v183_v47 = vadd.f32 %v182_v28, %v181_v34 }
  0xd1   :  { %v142_v48 = vrot.slane %v141_v29, 1  ;;  %v155_v49 = vadd.f32 %v154_v30, %v153_v23  ;;  %v168_v50 = vrot.slane %v167_v32, 2  ;;  %v187_v58 = vrot.slane %v186_v33, 4 }
  0xd2   :  { %v136_v51 = vadd.f32 %v135_v36, %v134_v41  ;;  %v149_v52 = vrot.slane %v148_v44, 1  ;;  %v162_v53 = vadd.f32 %v161_v46, %v160_v26  ;;  %v184_v61 = vrot.slane %v183_v47, 1  ;;  %v276_v36 = vld [vmem:[#allocation2 + $0x8] sm:$0x3f] }
  0xd3   :  { %v143_v55 = vadd.f32 %v142_v48, %v141_v29  ;;  %v156_v56 = vrot.slane %v155_v49, 1  ;;  %v169_v57 = vadd.f32 %v168_v50, %v167_v32  ;;  %v193_v62 = vsel %vm129_vm3, %v429_v4, 0.0 }
  0xd4   :  { %v150_v59 = vadd.f32 %v149_v52, %v148_v44  ;;  %v163_v60 = vrot.slane %v162_v53, 1  ;;  %v188_v2 = vadd.f32 %v187_v58, %v186_v33  ;;  %v194_v5 = vrot.slane %v193_v62, 4 }
  0xd5   :  { %v157_v63 = vadd.f32 %v156_v56, %v155_v49  ;;  %v170_v0 = vrot.slane %v169_v57, 1  ;;  %v200_v8 = vsel %vm129_vm3, %v431_v9, 0.0  ;;  %v207_v27 = vsel %vm129_vm3, %v433_v39, 0.0  ;;  %v311_v56 = vld [vmem:[#allocation2 + $0x10] sm:$0xff] }
  0xd6   :  { %v164_v7 = vadd.f32 %v163_v60, %v162_v53  ;;  %v264_v35 = vsel %vm263_vm4, %v143_v55, %v136_v51  ;;  %v189_v31 = vrot.slane %v188_v2, 2  ;;  %v195_v11 = vadd.f32 %v194_v5, %v193_v62  ;;  %314 = vst [vmem:[#allocation6 + $0x10] sm:$0xff] %v311_v56 }
  0xd7   :  { %v171_v10 = vadd.f32 %v170_v0, %v169_v57  ;;  %v201_v12 = vrot.slane %v200_v8, 4  ;;  %v178_v13 = vadd.f32 %v177_v54, %v176_v25  ;;  %v185_v34 = vadd.f32 %v184_v61, %v183_v47 }
  0xd8   :  { %v208_v40 = vrot.slane %v207_v27, 4  ;;  %v266_v4 = vsel %vm265_vm5, %v150_v59, %v264_v35  ;;  %v190_v14 = vadd.f32 %v189_v31, %v188_v2  ;;  %v196_v15 = vrot.slane %v195_v11, 2 }
  0xd9   :  { %v202_v37 = vadd.f32 %v201_v12, %v200_v8  ;;  %v268_v16 = vsel %vm267_vm6, %v157_v63, %v266_v4  ;;  %v283_v22 = vsel %vm263_vm4, %v185_v34, %v178_v13 }
  0xda   :  { %v209_v9 = vadd.f32 %v208_v40, %v207_v27  ;;  %v270_v39 = vsel %vm269_vm7, %v164_v7, %v268_v16  ;;  %v191_v18 = vrot.slane %v190_v14, 1  ;;  %v197_v19 = vadd.f32 %v196_v15, %v195_v11 }
  0xdb   :  { %v203_v20 = vrot.slane %v202_v37, 2  ;;  %v272_v21 = vsel %vm271_vm8, %v171_v10, %v270_v39 }
  0xdc   :  { %v210_v38 = vrot.slane %v209_v9, 2  ;;  %v274_v43 = vadd.f32 %v272_v21, %v256_v42  ;;  %v192_v23 = vadd.f32 %v191_v18, %v190_v14  ;;  %v198_v24 = vrot.slane %v197_v19, 1 }
  0xdd   :  { %v204_v25 = vadd.f32 %v203_v20, %v202_v37 }
  0xde   :  { %v211_v41 = vadd.f32 %v210_v38, %v209_v9  ;;  %275 = vst [vmem:[#allocation2] sm:$0x3f] %v274_v43  ;;  %v199_v45 = vadd.f32 %v198_v24, %v197_v19  ;;  %v284_v28 = vsel %vm265_vm5, %v192_v23, %v283_v22 }
  0xdf   :  { %v205_v26 = vrot.slane %v204_v25, 1 }
  0xe0   :  { %v212_v29 = vrot.slane %v211_v41, 1  ;;  %v285_v32 = vsel %vm267_vm6, %v199_v45, %v284_v28 }
  0xe1   :  { %v206_v30 = vadd.f32 %v205_v26, %v204_v25 }
  0xe2   :  { %v213_v33 = vadd.f32 %v212_v29, %v211_v41 }
  0xe3   :  { %v286_v44 = vsel %vm269_vm7, %v206_v30, %v285_v32 }
  0xe4   :  { %v287_v46 = vsel %vm271_vm8, %v213_v33, %v286_v44 }
  0xe5   :  { %v289_v47 = vadd.f32 %v287_v46, %v276_v36  ;;  %v309_v54 = vld [vmem:[#allocation2] sm:$0xff] }
  0xe6   :  { %312 = vst [vmem:[#allocation6] sm:$0xff] %v309_v54 }
  0xe7   :  { %290 = vst [vmem:[#allocation2 + $0x8] sm:$0x3f] %v289_v47 }
  0xee   :  { %v310_v55 = vld [vmem:[#allocation2 + $0x8] sm:$0xff] }
  0xef   :  { %313 = vst [vmem:[#allocation6 + $0x8] sm:$0xff] %v310_v55 }
 0x144   :  { %v328_v48 = vpop.xlane.xlu0 %327 }
 0x145   :  { %434 = vlog2.f32 %v328_v48 }
 0x14f   :  { %v435_v49 = vpop.eup %434 }
 0x150   :  { %v330_v50 = vmul.f32 0.6931472, %v435_v49 }
 0x152   :  { %v331_v51 = vadd.f32 %v330_v50, %v576_v6 }
 0x154   :  { %v332_v52 = vsub.f32 %v570_v3, %v331_v51 }
 0x156   :  { %v340_v53 = vmul.f32 %v595_v17, %v332_v52 }
 0x158   :  { %341 = vadd.xlane.f32.xlu1 %v340_v53 }
 0x159   :  { %469 = shalt.err (!%p466_p12)
}
 0x15a   :  { %s470_s29 = scalar_lea.hbm %s716_s5, 384 }
 0x15b   :  { %p471_p13 = scmp.ne.s32.totalorder %s716_s5, %s470_s29  ;;  %p474_p0 = scmp.lt.u32.totalorder %s470_s29, %s716_s5 }
 0x15d   :  { %p476_p1 = pnand %p474_p0, %p471_p13 }
 0x15f   :  { %479 = shalt.err (!%p476_p1)
}
 0x160   :  { %368 = dma.vmem_to_hbm [thread:$0]  %s366_s25, 384, %s716_s5, [#allocation5]   ;;  %vm355_vm9 = vcmp.eq.s32.totalorder %v562_v1, 1  ;;  %v352_v17 = vpop.xlane.xlu0 %351  ;;  %vm353_vm10 = vcmp.eq.s32.totalorder %v562_v1, 0 }
 0x161   :  { %s514_s12 = smov [#allocation7]   ;;  %v356_v58 = vsel %vm355_vm9, %v352_v17, 0.0 }
 0x162   :  { %s375_s13 = sshll.u32 %s514_s12, 4  ;;  %s376_s13 = int_to_ptr.vmem [resolvable:$true] %s375_s13 }
 0x163   :  { %s480_s14 = scalar_lea.vmem %s376_s13, 128  ;;  %p485_p3 = scmp.lt.s32.totalorder %s376_s13, %s376_s13 }
 0x164   :  { %p481_p2 = scmp.ne.s32.totalorder %s376_s13, %s480_s14  ;;  %p486_p4 = scmp.lt.s32.totalorder %s480_s14, %s480_s14 }
 0x166   :  { %p487_p5 = por %p486_p4, %p485_p3 }
 0x168   :  { %p488_p6 = pnand %p487_p5, %p481_p2 }
 0x1e5   :  { %v342_v3 = vpop.xlane.xlu1 %341 }
 0x1e6   :  { %v343_v6 = vsub.f32 0.0, %v342_v3 }
 0x1e8   :  { %v354_v57 = vmul.f32 %v352_v17, %v343_v6 }
 0x1ea   :  { %v357_v59 = vsel %vm353_vm10, %v354_v57, %v356_v58 }
 0x1eb   :  { %358 = vst [vmem:[#allocation7] sm:$0xff] %v357_v59 }
 0x1ec   :  { %491 = shalt.err (!%p488_p6)
}
 0x1ed   :  { %s492_s2 = scalar_lea.hbm %s717_s6, 128 }
 0x1ee   :  { %p493_p7 = scmp.ne.s32.totalorder %s717_s6, %s492_s2  ;;  %p496_p8 = scmp.lt.u32.totalorder %s492_s2, %s717_s6 }
 0x1f0   :  { %p498_p9 = pnand %p496_p8, %p493_p7 }
 0x1f2   :  { %501 = shalt.err (!%p498_p9)
}
 0x1f3   :  { %378 = dma.vmem_to_hbm [thread:$0]  %s376_s13, 128, %s717_s6, [#allocation8]  }
 0x1f4   :  { %504 = dma.done.wait [#allocation5], 384  }
 0x1f5   :  { %505 = vsyncadd [#allocation5], 4294966912 }
 0x1f6   :  { %506 = dma.done.wait [#allocation8], 128  }
 0x1f7   :  { %507 = vsyncadd [#allocation8], 4294967168 }
 0x1f8   :  { %385 = vsyncpa [#allocation4], 1 }
 0x1f9   :  { %386 = vsyncpa [#allocation5], 1 }
 0x1fa   :  { %387 = vsyncpa [#allocation8], 1 }

</bundles_post_ra>
